<compile_context>
chip_gen: v6e
topology: v6e:2x2x1
jax: 0.10.0
libtpu: 0.0.40
codegen_flags: <defaults>
</compile_context>

<pallas_src>
import math
from functools import partial

import numpy as np
import jax
import jax.numpy as jnp
from jax.experimental import pallas as pl
from jax.experimental.pallas import tpu as pltpu  # noqa: F401  (TPU backend assumed)

EMBED_SIZE = 32
MAX_LEN = 16
SEQ = 8
BATCH = 2


def make_encoding_table(embed_size=EMBED_SIZE, max_len=MAX_LEN):
    """Reproduce the PyTorch module's __init__ table exactly (same formula/order)."""
    assert embed_size % 2 == 0, "embed_size must be even (matches PyTorch i+1 indexing)"
    enc = np.zeros((max_len, embed_size), dtype=np.float32)
    for pos in range(max_len):
        for i in range(0, embed_size, 2):
            denom = 10000.0 ** (2 * i / embed_size)  # non-standard, as in the spec module
            enc[pos, i] = math.sin(pos / denom)
            enc[pos, i + 1] = math.cos(pos / denom)
    return enc


def _posenc_add_kernel(x_ref, enc_ref, out_ref):
    # Both operands are (N, S*E): pure aligned elementwise add, no broadcast.
    out_ref[...] = x_ref[...] + enc_ref[...]


@jax.jit
def _posenc_forward(x, enc2):
    """x: (N, S, E); enc2: (N, S*E) pre-broadcast constant; returns (N, S, E)."""
    N, S, E = x.shape
    W = S * E
    x2 = x.reshape(N, W)  # lane-dense slab (W is a multiple of 128 here)
    out2 = pl.pallas_call(
        _posenc_add_kernel,
        out_shape=jax.ShapeDtypeStruct((N, W), x2.dtype),
        # Gridless: whole arrays resident in VMEM, single kernel invocation.
        in_specs=[
            pl.BlockSpec((N, W), lambda: (0, 0)),
            pl.BlockSpec((N, W), lambda: (0, 0)),
        ],
        out_specs=pl.BlockSpec((N, W), lambda: (0, 0)),
        input_output_aliases={0: 0},  # alias output with the x slab
    )(x2, enc2)
    return out2.reshape(N, S, E)


class SimplePositionalEncodingPallas:
    """JAX/Pallas port of the PyTorch SimplePositionalEncoding module."""

    def __init__(self, embed_size=EMBED_SIZE, max_len=MAX_LEN):
        self.embed_size = embed_size
        self.max_len = max_len
        self._table = make_encoding_table(embed_size, max_len)  # host-side constant
        self._enc_cache = {}  # (batch, seq, dtype) -> pre-broadcast (N, S*E) device array

    def _enc_slab(self, batch, seq_len, dtype):
        key = (batch, seq_len, np.dtype(dtype).name)
        if key not in self._enc_cache:
            enc = self._table[:seq_len, :].reshape(1, seq_len * self.embed_size)
            enc = np.ascontiguousarray(
                np.broadcast_to(enc, (batch, seq_len * self.embed_size))
            )
            self._enc_cache[key] = jnp.asarray(enc, dtype=dtype)
        return self._enc_cache[key]

    def __call__(self, x):
        N, S, E = x.shape
        assert E == self.embed_size, "embedding dim mismatch"
        assert S <= self.max_len, "seq_len exceeds max_len"
        enc2 = self._enc_slab(N, S, x.dtype)  # hoisted constant, built once per shape
        return _posenc_forward(x, enc2)


def reference_jax(x, table):
    """Pure-JAX port of the PyTorch forward for verification."""
    S = x.shape[1]
    return x + jnp.asarray(table)[:S, :][None, :, :]


if __name__ == "__main__":
    rng = jax.random.PRNGKey(0)
    x = jax.random.normal(rng, (BATCH, SEQ, EMBED_SIZE), jnp.float32)

    module = SimplePositionalEncodingPallas(EMBED_SIZE, MAX_LEN)

    out = jax.block_until_ready(module(x))
    ref = jax.block_until_ready(reference_jax(x, module._table))

    max_err = float(jnp.max(jnp.abs(out - ref)))
    assert out.shape == x.shape, f"shape mismatch: {out.shape} vs {x.shape}"
    assert max_err < 1e-6, f"mismatch vs reference: {max_err}"

    print("KERNEL_OK")
</pallas_src>

<mosaic_0001>
module attributes {stable_mosaic.version = 11 : i64} {
  func.func @_posenc_add_kernel(%arg0: memref<2x256xf32, #tpu.memory_space<vmem>>, %arg1: memref<2x256xf32, #tpu.memory_space<vmem>>, %arg2: memref<2x256xf32, #tpu.memory_space<vmem>>) attributes {dimension_semantics = [], scalar_prefetch = 0 : i64, scratch_operands = 0 : i64, tpu.core_type = #tpu.core_type<tc>} {
    %c0 = arith.constant 0 : index
    %c0_0 = arith.constant 0 : index
    %0 = vector.load %arg0[%c0, %c0_0] : memref<2x256xf32, #tpu.memory_space<vmem>>, vector<2x256xf32>
    %c0_1 = arith.constant 0 : index
    %c0_2 = arith.constant 0 : index
    %1 = vector.load %arg1[%c0_1, %c0_2] : memref<2x256xf32, #tpu.memory_space<vmem>>, vector<2x256xf32>
    %2 = arith.addf %0, %1 : vector<2x256xf32>
    %c0_3 = arith.constant 0 : index
    %c0_4 = arith.constant 0 : index
    %3 = vector.load %arg2[%c0_3, %c0_4] : memref<2x256xf32, #tpu.memory_space<vmem>>, vector<2x256xf32>
    tpu.vector_store %arg2[%c0_3, %c0_4], %2 {strides = array<i32>} : memref<2x256xf32, #tpu.memory_space<vmem>>, vector<2x256xf32>,
    return
  }
}

</mosaic_0001>

<bundles_post_ra>
// kernel: _posenc_forward.1
= control target key start
LH: loop header
LB: loop body
LE: loop exit
PB: predicated region body
PF: predicated region fallthrough
CT: control target
= control target key end

     0   :  { %s43_s0 = inlined_call_operand.vmem [shape: f32[2,256], index: 0, kind: input, shape index: {}, may-alias: {0,2}]   ;;  %s44_s1 = inlined_call_operand.vmem [shape: f32[2,256], index: 1, kind: input, shape index: {}]   ;;  %s45_s2 = inlined_call_operand.vmem [shape: f32[2,256], index: 2, kind: output, shape index: {}, may-alias: {0,2}]  }
   0x1   :  { %v11_v0 = vld [vmem:[%s43_s0] sm:$0xf] }
   0x2   :  { %v12_v1 = vld [vmem:[%s44_s1] sm:$0xf] }
   0x3   :  { %v13_v2 = vadd.f32 %v12_v1, %v11_v0 }
   0x5   :  { %14 = vst [vmem:[%s45_s2] sm:$0xf] %v13_v2 }

</bundles_post_ra>
